<compile_context>
chip_gen: v5e
topology: v5e:2x2
jax: 0.10.0
libtpu: 0.0.40
codegen_flags: <defaults>
</compile_context>

<pallas_src>
import jax
import jax.numpy as jnp
from jax.experimental import pallas as pl
from jax.experimental.pallas import tpu as pltpu

NEG_INF = -10000000000.0


def _attention_flow_kernel(w_ref, c_ref, q_ref, qT_ref, cm_ref, qm_ref, out_ref,
                           m_sc, l_sc, acc_sc):
    f32 = jnp.float32
    t = pl.program_id(1)
    num_t = pl.num_programs(1)

    c = c_ref[...]                                   # (Bt, Tct, D)  input dtype
    q = q_ref[...]                                   # (Bt, Tq, D)   MXU dtype
    qT = qT_ref[...]                                 # (Bt, D, Tq)   MXU dtype
    cm = cm_ref[...]                                 # (Bt, Tct, 1)  f32, 1.0 = padded
    qm = qm_ref[...]                                 # (Bt, 1, Tq)   f32, 1.0 = padded
    w = w_ref[...]                                   # (3, D): [w_context, w_query, w_cross]
    wc, wq, wx = w[0:1, :], w[1:2, :], w[2:3, :]

    Bt, Tct, D = c.shape
    out_dt = out_ref.dtype
    # bf16 I/O -> keep the post-attention elementwise work in bf16 (v6e/v7x);
    # anything else (f32, including the v5e path) stays f32.
    sec_dt = c.dtype if c.dtype == jnp.bfloat16 else f32

    @pl.when(t == 0)
    def _init():
        m_sc[...] = jnp.full(m_sc.shape, -jnp.inf, f32)
        l_sc[...] = jnp.zeros(l_sc.shape, f32)
        acc_sc[...] = jnp.zeros(acc_sc.shape, f32)

    # --- similarity: S = (c*wx + wq) @ q^T + c.wc (q.wq folded into the matmul) --
    lhs = (c * wx + wq).astype(qT.dtype)                              # MXU operand dtype
    cross = jnp.einsum("btd,bdk->btk", lhs, qT,
                       preferred_element_type=f32)                    # (Bt,Tct,Tq)  MXU
    s_c = jnp.sum((c * wc).astype(f32), axis=-1, keepdims=True)       # (Bt,Tct,1)

    # additive masking (finite NEG_INF; doubly-masked cells just get 2*NEG_INF)
    row_bias = s_c + cm * NEG_INF                                     # (Bt,Tct,1)
    col_bias = qm * NEG_INF                                           # (Bt,1,Tq)
    sim = cross + row_bias + col_bias                                 # (Bt,Tct,Tq) f32

    # --- c2q attention: softmax over the query axis (lanes) ----------------------
    m = jnp.max(sim, axis=-1, keepdims=True)                          # (Bt,Tct,1)
    p = jnp.exp(sim - m)
    p = p * pl.reciprocal(jnp.sum(p, axis=-1, keepdims=True), approx=True)
    c2q = jnp.einsum("btk,bkd->btd", p.astype(q.dtype), q,
                     preferred_element_type=f32)                      # (Bt,Tct,D)  MXU

    # --- q2c attention: online softmax over the Tc grid axis (reuses row max m) --
    tile_max = jnp.max(m, axis=1, keepdims=True)                      # (Bt,1,1)
    m_prev = m_sc[...]
    m_new = jnp.maximum(m_prev, tile_max)
    scale = jnp.exp(m_prev - m_new)                                   # (Bt,1,1)
    e = jnp.exp(m - m_new)                                            # (Bt,Tct,1)
    l_sc[...] = l_sc[...] * scale + jnp.sum(e, axis=1, keepdims=True)
    # contraction over the Tc-tile axis -> MXU, not VPU mul + XLU sublane reduce
    acc_sc[...] = acc_sc[...] * scale + jnp.einsum(
        "btk,btd->bkd", e.astype(c.dtype), c, preferred_element_type=f32)
    m_sc[...] = m_new

    # --- output sections for this Tc tile (c*q2c is written at finalize) ---------
    keep = (cm <= 0.5).astype(sec_dt)                                 # 0.0 on padded rows
    cf = c.astype(sec_dt) * keep
    c2q_s = c2q.astype(sec_dt) * keep
    sec0 = cf.astype(out_dt)
    sec1 = c2q_s.astype(out_dt)
    sec2 = (cf * c2q_s).astype(out_dt)

    row0 = t * Tct
    if Tct % 8 == 0:
        row0 = pl.multiple_of(row0, 8)
    rows = pl.ds(row0, Tct)

    if D % 128 == 0:
        # 128-aligned sections: direct lane-dense stores, no concat temporary.
        out_ref[:, rows, 0:D] = sec0
        out_ref[:, rows, D:2 * D] = sec1
        out_ref[:, rows, 2 * D:3 * D] = sec2
    else:
        # single full-width (lane-padded) store; slot 3 is overwritten at finalize
        Dout = out_ref.shape[-1]
        parts = [sec0, sec1, sec2, sec0]
        if Dout > 4 * D:
            parts.append(jnp.zeros((Bt, Tct, Dout - 4 * D), out_dt))
        out_ref[:, rows, :] = jnp.concatenate(parts, axis=-1)

    # --- finalize: q2c is only known after the last Tc tile ----------------------
    @pl.when(t == num_t - 1)
    def _finalize():
        q2c = (acc_sc[...] * pl.reciprocal(l_sc[...], approx=True)).astype(sec_dt)
        base = out_ref[:, :, 0:D].astype(sec_dt)          # masked context, all Tc rows
        out_ref[:, :, 3 * D:4 * D] = (base * q2c).astype(out_dt)


def _round_up(x, m):
    return ((x + m - 1) // m) * m


def _vmem_capacity_bytes():
    """Per-TensorCore VMEM capacity; conservative (v7x) fallback if unknown."""
    try:
        info = pltpu.get_tpu_info()
        for name in ("vmem_capacity_bytes", "vmem_size_bytes", "vmem_bytes"):
            cap = getattr(info, name, None)
            if cap:
                return int(cap)
    except Exception:
        pass
    return 64 * 1024 * 1024


def _pick_tiles(B, Tc, Tq, D, Dout, in_item, q_item, out_item, budget):
    """Pick (Bt, Tct) = batch fold and Tc tile.

    * blocks as large as the generation-aware VMEM budget allows (big DMA
      blocks -> close to HBM roofline, fewer ~0.35us grid steps)
    * >= 2 steps along the parallel b axis when B >= 2 (v7x megacore)
    * >= 2 steps along the Tc axis when there are few b steps, so each core
      still overlaps DMA with compute.
    Tct must be a multiple of 8 (sublane constraint) or equal to Tc.
    """
    tc_divs = [d for d in range(1, Tc + 1)
               if Tc % d == 0 and (d % 8 == 0 or d == Tc)]

    def est(bt, tct):
        # inputs (x2: Pallas double-buffers every block)
        inputs = bt * (tct * D * in_item            # context tile
                       + 2 * Tq * D * q_item        # query and query^T
                       + tct * 128 * 4              # context-mask tile (lane padded)
                       + 8 * Tq * 4)                # query-mask tile (sublane padded)
        # output block is resident across the Tc axis (full Tc rows)
        output = bt * Tc * Dout * out_item
        # f32 intermediates: sim/p (~3x tct*Tq), lhs/c2q/sections (~8x tct*D),
        # q2c accumulators and small scratch
        interm = bt * (3 * tct * Tq + 8 * tct * D + 16 * max(D, 128)) * 4
        return 2 * inputs + 2 * output + interm

    tct_min = tc_divs[0]
    # batch fold: no divisibility requirement (the caller pads B)
    fits_b = [bt for bt in range(1, B + 1) if est(bt, tct_min) <= budget] or [1]
    multi_b = [bt for bt in fits_b if -(-B // bt) >= 2]
    Bt = max(multi_b) if (multi_b and B >= 2) else max(fits_b)
    nb = -(-B // Bt)

    fits_t = [tct for tct in tc_divs if est(Bt, tct) <= budget] or [tct_min]
    if nb < 4:
        multi_t = [tct for tct in fits_t if Tc // tct >= 2]
        Tct = max(multi_t) if multi_t else max(fits_t)
    else:
        Tct = max(fits_t)
    return Bt, Tct


def attention_flow_layer(context_info, context_mask, query_info, query_mask,
                         weight, *, use_bf16_mxu=True):
    """weight: (1, model_dim*6) == (1, 3*D), the nn.Linear weight (no bias).

    I/O dtype follows context_info (pass bf16 to halve the dominant HBM streams
    on v6e/v7x; keep f32 on v5e, which has no native bf16 VPU/EUP).
    use_bf16_mxu: cast MXU matmul operands to bf16 (f32 accumulate) -> native
    MXU rate instead of f32 multi-pass on all generations.
    """
    B, Tc, D = context_info.shape
    Tq = query_info.shape[1]
    dtype = context_info.dtype

    w3 = weight.reshape(3, D).astype(dtype)              # rows: context / query / cross
    q_dt = jnp.bfloat16 if use_bf16_mxu else dtype
    q = query_info.astype(q_dt)
    qT = jnp.swapaxes(q, 1, 2)                            # (B, D, Tq): transpose-free cross matmul
    cm = context_mask.astype(jnp.float32).reshape(B, Tc, 1)
    qm = query_mask.astype(jnp.float32).reshape(B, 1, Tq)
    ci = context_info

    # lane-dense output stores: pad the output last dim to a multiple of 128
    # when 4*D is not already aligned (sliced off below).
    Dout = 4 * D if D % 128 == 0 else _round_up(4 * D, 128)

    cap = _vmem_capacity_bytes()
    budget = int(cap * 0.65)                              # ~35% headroom for slop/spills
    vmem_limit = int(cap * 0.85)

    in_item = jnp.dtype(dtype).itemsize
    q_item = jnp.dtype(q_dt).itemsize
    Bt, Tct = _pick_tiles(B, Tc, Tq, D, Dout, in_item, q_item, in_item, budget)

    # pad B so the batch fold need not divide it; padded elements are fully
    # masked (-> zero rows) and sliced off afterwards.
    Bp = _round_up(B, Bt)
    if Bp != B:
        pb = Bp - B
        ci = jnp.pad(ci, ((0, pb), (0, 0), (0, 0)))
        q = jnp.pad(q, ((0, pb), (0, 0), (0, 0)))
        qT = jnp.pad(qT, ((0, pb), (0, 0), (0, 0)))
        cm = jnp.pad(cm, ((0, pb), (0, 0), (0, 0)), constant_values=1.0)
        qm = jnp.pad(qm, ((0, pb), (0, 0), (0, 0)), constant_values=1.0)

    grid = (Bp // Bt, Tc // Tct)

    out = pl.pallas_call(
        _attention_flow_kernel,
        out_shape=jax.ShapeDtypeStruct((Bp, Tc, Dout), dtype),
        grid_spec=pltpu.PrefetchScalarGridSpec(
            num_scalar_prefetch=0,
            grid=grid,
            in_specs=[
                pl.BlockSpec((3, D), lambda b, t: (0, 0)),          # weights: DMA'd once
                pl.BlockSpec((Bt, Tct, D), lambda b, t: (b, t, 0)),  # context tile
                pl.BlockSpec((Bt, Tq, D), lambda b, t: (b, 0, 0)),   # query
                pl.BlockSpec((Bt, D, Tq), lambda b, t: (b, 0, 0)),   # query^T
                pl.BlockSpec((Bt, Tct, 1), lambda b, t: (b, t, 0)),  # context mask
                pl.BlockSpec((Bt, 1, Tq), lambda b, t: (b, 0, 0)),   # query mask
            ],
            # output block resident across the Tc axis (accumulator pattern):
            # written back to HBM once per batch block.
            out_specs=pl.BlockSpec((Bt, Tc, Dout), lambda b, t: (b, 0, 0)),
            scratch_shapes=[
                pltpu.VMEM((Bt, 1, 1), jnp.float32),   # q2c running max
                pltpu.VMEM((Bt, 1, 1), jnp.float32),   # q2c running denominator
                pltpu.VMEM((Bt, 1, D), jnp.float32),   # q2c running numerator
            ],
        ),
        compiler_params=pltpu.CompilerParams(
            dimension_semantics=("parallel", "arbitrary"),
            vmem_limit_bytes=vmem_limit,
        ),
    )(w3, ci, q, qT, cm, qm)

    if Bp != B or Dout != 4 * D:
        out = out[:B, :, :4 * D]
    return out


def _reference(context_info, context_mask, query_info, query_mask, weight):
    """Plain-JAX reference matching the PyTorch forward semantics exactly."""
    B, Tc, D = context_info.shape
    Tq = query_info.shape[1]
    tc = jnp.broadcast_to(context_info[:, :, None, :], (B, Tc, Tq, D))
    tq = jnp.broadcast_to(query_info[:, None, :, :], (B, Tc, Tq, D))
    cm = context_mask.astype(jnp.int32)
    qm = query_mask.astype(jnp.int32)
    attn_mask = (cm[:, :, None] + qm[:, None, :]) >= 1                 # (B,Tc,Tq)
    concat = jnp.concatenate([tc, tq, tc * tq], axis=3)                # (B,Tc,Tq,3D)
    concat = jnp.where(attn_mask[..., None], 0.0, concat)
    sim = jnp.einsum("bijd,d->bij", concat, weight[0])
    sim = jnp.where(attn_mask, NEG_INF, sim)
    c2q_p = jax.nn.softmax(sim, axis=-1)
    c2q = jnp.einsum("bij,bjd->bid", c2q_p, query_info)
    q2c_p = jax.nn.softmax(jnp.max(sim, axis=2), axis=1)               # (B,Tc)
    q2c = jnp.einsum("bi,bid->bd", q2c_p, context_info)[:, None, :]
    q2c = jnp.broadcast_to(q2c, (B, Tc, D))
    result = jnp.concatenate(
        [context_info, c2q, context_info * c2q, context_info * q2c], axis=2)
    result = jnp.where(context_mask[:, :, None], 0.0, result)
    return result


if __name__ == "__main__":
    model_dim = 16
    D = 2 * model_dim          # context/query feature dim = model_dim * 2
    B, Tc, Tq = 2, 16, 8

    key = jax.random.PRNGKey(0)
    k1, k2, k3 = jax.random.split(key, 3)
    context_info = jax.random.normal(k1, (B, Tc, D), dtype=jnp.float32)
    query_info = jax.random.normal(k2, (B, Tq, D), dtype=jnp.float32)
    # nn.Linear(model_dim*6, 1, bias=False) weight, deterministic init
    weight = (jax.random.normal(k3, (1, 6 * model_dim), dtype=jnp.float32)
              / jnp.sqrt(6.0 * model_dim))

    # masks: True = padded position (deterministic valid lengths)
    ctx_lens = jnp.array([16, 12])
    qry_lens = jnp.array([8, 5])
    context_mask = jnp.arange(Tc)[None, :] >= ctx_lens[:, None]        # (B, Tc) bool
    query_mask = jnp.arange(Tq)[None, :] >= qry_lens[:, None]          # (B, Tq) bool

    ref = _reference(context_info, context_mask, query_info, query_mask, weight)

    # full-precision MXU path: tight check of the fused/tiled kernel semantics
    # (only pl.reciprocal(approx=True) separates it from exact softmax).
    out_f32 = attention_flow_layer(context_info, context_mask, query_info,
                                   query_mask, weight, use_bf16_mxu=False)
    out_f32 = jax.block_until_ready(out_f32)
    assert out_f32.shape == (B, Tc, 8 * model_dim)
    assert jnp.allclose(out_f32, ref, atol=5e-3, rtol=5e-3), "f32 mismatch vs reference"

    # default perf path: bf16 MXU operands (f32 accumulate) + approx reciprocal.
    # bf16 keeps ~3 significant decimal digits, so absolute errors of a few e-2
    # on the c*c2q products (|c| up to ~3) are expected while the mean error
    # stays well below 1e-2.
    out = attention_flow_layer(context_info, context_mask, query_info,
                               query_mask, weight)
    out = jax.block_until_ready(out)
    assert out.shape == (B, Tc, 8 * model_dim)
    assert float(jnp.mean(jnp.abs(out - ref))) < 1e-2, "bf16-MXU mean error too large"
    assert jnp.allclose(out, ref, atol=5e-2, rtol=5e-2), "bf16-MXU mismatch vs reference"

    print("KERNEL_OK")
</pallas_src>

<mosaic_0001>
module attributes {stable_mosaic.version = 11 : i64} {
  func.func @_attention_flow_kernel(%arg0: i32, %arg1: i32, %arg2: memref<3x32xf32, #tpu.memory_space<vmem>>, %arg3: memref<1x8x32xf32, #tpu.memory_space<vmem>>, %arg4: memref<1x8x32xf32, #tpu.memory_space<vmem>>, %arg5: memref<1x32x8xf32, #tpu.memory_space<vmem>>, %arg6: memref<1x8x1xf32, #tpu.memory_space<vmem>>, %arg7: memref<1x1x8xf32, #tpu.memory_space<vmem>>, %arg8: memref<1x16x128xf32, #tpu.memory_space<vmem>>, %arg9: memref<1x1x1xf32, #tpu.memory_space<vmem>>, %arg10: memref<1x1x1xf32, #tpu.memory_space<vmem>>, %arg11: memref<1x1x32xf32, #tpu.memory_space<vmem>>) attributes {dimension_semantics = [#tpu.dimension_semantics<parallel>, #tpu.dimension_semantics<arbitrary>], iteration_bounds = array<i64: 2, 2>, scalar_prefetch = 0 : i64, scratch_operands = 3 : i64, tpu.core_type = #tpu.core_type<tc>, window_params = [{pipeline_mode = #tpu.pipeline_mode<synchronous>, transform_indices = @transform_0, window_bounds = array<i64: 3, 32>}, {transform_indices = @transform_1, window_bounds = array<i64: 1, 8, 32>}, {transform_indices = @transform_2, window_bounds = array<i64: 1, 8, 32>}, {transform_indices = @transform_3, window_bounds = array<i64: 1, 32, 8>}, {transform_indices = @transform_4, window_bounds = array<i64: 1, 8, 1>}, {transform_indices = @transform_5, window_bounds = array<i64: 1, 1, 8>}, {transform_indices = @transform_6, window_bounds = array<i64: 1, 16, 128>}]} {
    %c0 = arith.constant 0 : index
    %c0_0 = arith.constant 0 : index
    %c0_1 = arith.constant 0 : index
    %0 = vector.load %arg3[%c0, %c0_0, %c0_1] : memref<1x8x32xf32, #tpu.memory_space<vmem>>, vector<1x8x32xf32>
    %c0_2 = arith.constant 0 : index
    %c0_3 = arith.constant 0 : index
    %c0_4 = arith.constant 0 : index
    %1 = vector.load %arg4[%c0_2, %c0_3, %c0_4] : memref<1x8x32xf32, #tpu.memory_space<vmem>>, vector<1x8x32xf32>
    %c0_5 = arith.constant 0 : index
    %c0_6 = arith.constant 0 : index
    %c0_7 = arith.constant 0 : index
    %2 = vector.load %arg5[%c0_5, %c0_6, %c0_7] : memref<1x32x8xf32, #tpu.memory_space<vmem>>, vector<1x32x8xf32>
    %c0_8 = arith.constant 0 : index
    %c0_9 = arith.constant 0 : index
    %c0_10 = arith.constant 0 : index
    %3 = vector.load %arg6[%c0_8, %c0_9, %c0_10] : memref<1x8x1xf32, #tpu.memory_space<vmem>>, vector<1x8x1xf32>
    %c0_11 = arith.constant 0 : index
    %c0_12 = arith.constant 0 : index
    %c0_13 = arith.constant 0 : index
    %4 = vector.load %arg7[%c0_11, %c0_12, %c0_13] : memref<1x1x8xf32, #tpu.memory_space<vmem>>, vector<1x1x8xf32>
    %c0_14 = arith.constant 0 : index
    %c0_15 = arith.constant 0 : index
    %5 = vector.load %arg2[%c0_14, %c0_15] : memref<3x32xf32, #tpu.memory_space<vmem>>, vector<3x32xf32>
    %6 = vector.extract_strided_slice %5 {offsets = [0, 0], sizes = [1, 32], strides = [1, 1]} : vector<3x32xf32> to vector<1x32xf32>
    %7 = vector.extract_strided_slice %5 {offsets = [1, 0], sizes = [1, 32], strides = [1, 1]} : vector<3x32xf32> to vector<1x32xf32>
    %8 = vector.extract_strided_slice %5 {offsets = [2, 0], sizes = [1, 32], strides = [1, 1]} : vector<3x32xf32> to vector<1x32xf32>
    %c0_i32 = arith.constant 0 : i32
    %9 = arith.cmpi eq, %arg1, %c0_i32 : i32
    %10 = arith.extui %9 : i1 to i32
    %c0_i32_16 = arith.constant 0 : i32
    %11 = arith.cmpi ne, %10, %c0_i32_16 : i32
    scf.if %11 {
      %cst_48 = arith.constant 0xFF800000 : f32
      %83 = vector.broadcast %cst_48 : f32 to vector<1x1x1xf32>
      %c0_49 = arith.constant 0 : index
      %c0_50 = arith.constant 0 : index
      %c0_51 = arith.constant 0 : index
      %84 = vector.load %arg9[%c0_49, %c0_50, %c0_51] : memref<1x1x1xf32, #tpu.memory_space<vmem>>, vector<1x1x1xf32>
      tpu.vector_store %arg9[%c0_49, %c0_50, %c0_51], %83 {strides = array<i32>} : memref<1x1x1xf32, #tpu.memory_space<vmem>>, vector<1x1x1xf32>,
      %cst_52 = arith.constant 0.000000e+00 : f32
      %85 = vector.broadcast %cst_52 : f32 to vector<1x1x1xf32>
      %c0_53 = arith.constant 0 : index
      %c0_54 = arith.constant 0 : index
      %c0_55 = arith.constant 0 : index
      %86 = vector.load %arg10[%c0_53, %c0_54, %c0_55] : memref<1x1x1xf32, #tpu.memory_space<vmem>>, vector<1x1x1xf32>
      tpu.vector_store %arg10[%c0_53, %c0_54, %c0_55], %85 {strides = array<i32>} : memref<1x1x1xf32, #tpu.memory_space<vmem>>, vector<1x1x1xf32>,
      %cst_56 = arith.constant 0.000000e+00 : f32
      %87 = vector.broadcast %cst_56 : f32 to vector<1x1x32xf32>
      %c0_57 = arith.constant 0 : index
      %c0_58 = arith.constant 0 : index
      %c0_59 = arith.constant 0 : index
      %88 = vector.load %arg11[%c0_57, %c0_58, %c0_59] : memref<1x1x32xf32, #tpu.memory_space<vmem>>, vector<1x1x32xf32>
      tpu.vector_store %arg11[%c0_57, %c0_58, %c0_59], %87 {strides = array<i32>} : memref<1x1x32xf32, #tpu.memory_space<vmem>>, vector<1x1x32xf32>,
    } else {
    }
    %12 = vector.shape_cast %8 : vector<1x32xf32> to vector<1x1x32xf32>
    %13 = vector.broadcast %12 : vector<1x1x32xf32> to vector<1x8x32xf32>
    %14 = arith.mulf %0, %13 : vector<1x8x32xf32>
    %15 = vector.shape_cast %7 : vector<1x32xf32> to vector<1x1x32xf32>
    %16 = vector.broadcast %15 : vector<1x1x32xf32> to vector<1x8x32xf32>
    %17 = arith.addf %14, %16 : vector<1x8x32xf32>
    "tpu.trace_start"() <{level = 10 : i32, message = "btd,bdk->btk"}> : () -> ()
    %cst = arith.constant dense<0.000000e+00> : vector<1x8x8xf32>
    %18 = tpu.matmul %17, %2, %cst {dimension_numbers = #tpu.dot_dimension_numbers<[2], [1], [1], [2], [0, 0, 0, 1, 1, 2], [0], [0]>} : vector<1x8x32xf32>, vector<1x32x8xf32>, vector<1x8x8xf32> -> vector<1x8x8xf32>
    "tpu.trace_stop"() : () -> ()
    %19 = vector.shape_cast %6 : vector<1x32xf32> to vector<1x1x32xf32>
    %20 = vector.broadcast %19 : vector<1x1x32xf32> to vector<1x8x32xf32>
    %21 = arith.mulf %0, %20 : vector<1x8x32xf32>
    %cst_17 = arith.constant dense<0.000000e+00> : vector<1x8xf32>
    %22 = vector.multi_reduction <add>, %21, %cst_17 [2] : vector<1x8x32xf32> to vector<1x8xf32>
    %23 = vector.shape_cast %22 : vector<1x8xf32> to vector<1x8x1xf32>
    %cst_18 = arith.constant -1.000000e+10 : f32
    %24 = vector.broadcast %cst_18 : f32 to vector<1x8x1xf32>
    %25 = arith.mulf %3, %24 : vector<1x8x1xf32>
    %26 = arith.addf %23, %25 : vector<1x8x1xf32>
    %cst_19 = arith.constant -1.000000e+10 : f32
    %27 = vector.broadcast %cst_19 : f32 to vector<1x1x8xf32>
    %28 = arith.mulf %4, %27 : vector<1x1x8xf32>
    %29 = vector.broadcast %26 : vector<1x8x1xf32> to vector<1x8x8xf32>
    %30 = arith.addf %18, %29 : vector<1x8x8xf32>
    %31 = vector.broadcast %28 : vector<1x1x8xf32> to vector<1x8x8xf32>
    %32 = arith.addf %30, %31 : vector<1x8x8xf32>
    %cst_20 = arith.constant dense<0xFF800000> : vector<1x8xf32>
    %33 = vector.multi_reduction <maximumf>, %32, %cst_20 [2] : vector<1x8x8xf32> to vector<1x8xf32>
    %34 = vector.shape_cast %33 : vector<1x8xf32> to vector<1x8x1xf32>
    %35 = vector.broadcast %34 : vector<1x8x1xf32> to vector<1x8x8xf32>
    %36 = arith.subf %32, %35 : vector<1x8x8xf32>
    %37 = math.exp %36 : vector<1x8x8xf32>
    %cst_21 = arith.constant dense<0.000000e+00> : vector<1x8xf32>
    %38 = vector.multi_reduction <add>, %37, %cst_21 [2] : vector<1x8x8xf32> to vector<1x8xf32>
    %39 = vector.shape_cast %38 : vector<1x8xf32> to vector<1x8x1xf32>
    %40 = tpu.reciprocal %39 {approx = true} : vector<1x8x1xf32> -> vector<1x8x1xf32>
    %41 = vector.broadcast %40 : vector<1x8x1xf32> to vector<1x8x8xf32>
    %42 = arith.mulf %37, %41 : vector<1x8x8xf32>
    "tpu.trace_start"() <{level = 10 : i32, message = "btk,bkd->btd"}> : () -> ()
    %cst_22 = arith.constant dense<0.000000e+00> : vector<1x8x32xf32>
    %43 = tpu.matmul %42, %1, %cst_22 {dimension_numbers = #tpu.dot_dimension_numbers<[2], [1], [1], [2], [0, 0, 0, 1, 1, 2], [0], [0]>} : vector<1x8x8xf32>, vector<1x8x32xf32>, vector<1x8x32xf32> -> vector<1x8x32xf32>
    "tpu.trace_stop"() : () -> ()
    %cst_23 = arith.constant dense<0xFF800000> : vector<1x1xf32>
    %44 = vector.multi_reduction <maximumf>, %34, %cst_23 [1] : vector<1x8x1xf32> to vector<1x1xf32>
    %45 = vector.shape_cast %44 : vector<1x1xf32> to vector<1x1x1xf32>
    %c0_24 = arith.constant 0 : index
    %c0_25 = arith.constant 0 : index
    %c0_26 = arith.constant 0 : index
    %46 = vector.load %arg9[%c0_24, %c0_25, %c0_26] : memref<1x1x1xf32, #tpu.memory_space<vmem>>, vector<1x1x1xf32>
    %47 = arith.maximumf %46, %45 : vector<1x1x1xf32>
    %48 = arith.subf %46, %47 : vector<1x1x1xf32>
    %49 = math.exp %48 : vector<1x1x1xf32>
    %50 = vector.broadcast %47 : vector<1x1x1xf32> to vector<1x8x1xf32>
    %51 = arith.subf %34, %50 : vector<1x8x1xf32>
    %52 = math.exp %51 : vector<1x8x1xf32>
    %c0_27 = arith.constant 0 : index
    %c0_28 = arith.constant 0 : index
    %c0_29 = arith.constant 0 : index
    %53 = vector.load %arg10[%c0_27, %c0_28, %c0_29] : memref<1x1x1xf32, #tpu.memory_space<vmem>>, vector<1x1x1xf32>
    %54 = arith.mulf %53, %49 : vector<1x1x1xf32>
    %cst_30 = arith.constant dense<0.000000e+00> : vector<1x1xf32>
    %55 = vector.multi_reduction <add>, %52, %cst_30 [1] : vector<1x8x1xf32> to vector<1x1xf32>
    %56 = vector.shape_cast %55 : vector<1x1xf32> to vector<1x1x1xf32>
    %57 = arith.addf %54, %56 : vector<1x1x1xf32>
    %c0_31 = arith.constant 0 : index
    %c0_32 = arith.constant 0 : index
    %c0_33 = arith.constant 0 : index
    %58 = vector.load %arg10[%c0_31, %c0_32, %c0_33] : memref<1x1x1xf32, #tpu.memory_space<vmem>>, vector<1x1x1xf32>
    tpu.vector_store %arg10[%c0_31, %c0_32, %c0_33], %57 {strides = array<i32>} : memref<1x1x1xf32, #tpu.memory_space<vmem>>, vector<1x1x1xf32>,
    %c0_34 = arith.constant 0 : index
    %c0_35 = arith.constant 0 : index
    %c0_36 = arith.constant 0 : index
    %59 = vector.load %arg11[%c0_34, %c0_35, %c0_36] : memref<1x1x32xf32, #tpu.memory_space<vmem>>, vector<1x1x32xf32>
    %60 = vector.broadcast %49 : vector<1x1x1xf32> to vector<1x1x32xf32>
    %61 = arith.mulf %59, %60 : vector<1x1x32xf32>
    "tpu.trace_start"() <{level = 10 : i32, message = "btk,btd->bkd"}> : () -> ()
    %cst_37 = arith.constant dense<0.000000e+00> : vector<1x1x32xf32>
    %62 = tpu.matmul %52, %0, %cst_37 {dimension_numbers = #tpu.dot_dimension_numbers<[1], [1], [2], [2], [0, 0, 0, 2, 1, 2], [0], [0]>} : vector<1x8x1xf32>, vector<1x8x32xf32>, vector<1x1x32xf32> -> vector<1x1x32xf32>
    "tpu.trace_stop"() : () -> ()
    %63 = arith.addf %61, %62 : vector<1x1x32xf32>
    %c0_38 = arith.constant 0 : index
    %c0_39 = arith.constant 0 : index
    %c0_40 = arith.constant 0 : index
    %64 = vector.load %arg11[%c0_38, %c0_39, %c0_40] : memref<1x1x32xf32, #tpu.memory_space<vmem>>, vector<1x1x32xf32>
    tpu.vector_store %arg11[%c0_38, %c0_39, %c0_40], %63 {strides = array<i32>} : memref<1x1x32xf32, #tpu.memory_space<vmem>>, vector<1x1x32xf32>,
    %c0_41 = arith.constant 0 : index
    %c0_42 = arith.constant 0 : index
    %c0_43 = arith.constant 0 : index
    %65 = vector.load %arg9[%c0_41, %c0_42, %c0_43] : memref<1x1x1xf32, #tpu.memory_space<vmem>>, vector<1x1x1xf32>
    tpu.vector_store %arg9[%c0_41, %c0_42, %c0_43], %47 {strides = array<i32>} : memref<1x1x1xf32, #tpu.memory_space<vmem>>, vector<1x1x1xf32>,
    %cst_44 = arith.constant 5.000000e-01 : f32
    %66 = vector.broadcast %cst_44 : f32 to vector<1x8x1xf32>
    %67 = arith.cmpf ole, %3, %66 : vector<1x8x1xf32>
    %68 = arith.extui %67 : vector<1x8x1xi1> to vector<1x8x1xi32>
    %69 = arith.sitofp %68 : vector<1x8x1xi32> to vector<1x8x1xf32>
    %70 = vector.broadcast %69 : vector<1x8x1xf32> to vector<1x8x32xf32>
    %71 = arith.mulf %0, %70 : vector<1x8x32xf32>
    %72 = vector.broadcast %69 : vector<1x8x1xf32> to vector<1x8x32xf32>
    %73 = arith.mulf %43, %72 : vector<1x8x32xf32>
    %74 = arith.mulf %71, %73 : vector<1x8x32xf32>
    %c8_i32 = arith.constant 8 : i32
    %75 = arith.muli %arg1, %c8_i32 : i32
    %76 = tpu.assume_multiple %75, 8 : i32
    %77 = tpu.concatenate %71, %73, %74, %71 in 2 : vector<1x8x32xf32>, vector<1x8x32xf32>, vector<1x8x32xf32>, vector<1x8x32xf32> -> vector<1x8x128xf32>
    %c0_45 = arith.constant 0 : index
    %78 = arith.index_cast %76 : i32 to index
    %c0_46 = arith.constant 0 : index
    %79 = vector.load %arg8[%c0_45, %78, %c0_46] : memref<1x16x128xf32, #tpu.memory_space<vmem>>, vector<1x8x128xf32>
    tpu.vector_store %arg8[%c0_45, %78, %c0_46], %77 {strides = array<i32>} : memref<1x16x128xf32, #tpu.memory_space<vmem>>, vector<1x8x128xf32>,
    %c1_i32 = arith.constant 1 : i32
    %80 = arith.cmpi eq, %arg1, %c1_i32 : i32
    %81 = arith.extui %80 : i1 to i32
    %c0_i32_47 = arith.constant 0 : i32
    %82 = arith.cmpi ne, %81, %c0_i32_47 : i32
    scf.if %82 {
      %c0_48 = arith.constant 0 : index
      %c0_49 = arith.constant 0 : index
      %c0_50 = arith.constant 0 : index
      %83 = vector.load %arg11[%c0_48, %c0_49, %c0_50] : memref<1x1x32xf32, #tpu.memory_space<vmem>>, vector<1x1x32xf32>
      %c0_51 = arith.constant 0 : index
      %c0_52 = arith.constant 0 : index
      %c0_53 = arith.constant 0 : index
      %84 = vector.load %arg10[%c0_51, %c0_52, %c0_53] : memref<1x1x1xf32, #tpu.memory_space<vmem>>, vector<1x1x1xf32>
      %85 = tpu.reciprocal %84 {approx = true} : vector<1x1x1xf32> -> vector<1x1x1xf32>
      %86 = vector.broadcast %85 : vector<1x1x1xf32> to vector<1x1x32xf32>
      %87 = arith.mulf %83, %86 : vector<1x1x32xf32>
      %c0_54 = arith.constant 0 : index
      %c0_55 = arith.constant 0 : index
      %c0_56 = arith.constant 0 : index
      %88 = vector.load %arg8[%c0_54, %c0_55, %c0_56] : memref<1x16x128xf32, #tpu.memory_space<vmem>>, vector<1x16x32xf32>
      %89 = vector.broadcast %87 : vector<1x1x32xf32> to vector<1x16x32xf32>
      %90 = arith.mulf %88, %89 : vector<1x16x32xf32>
      %c0_57 = arith.constant 0 : index
      %c0_58 = arith.constant 0 : index
      %c96 = arith.constant 96 : index
      %91 = vector.load %arg8[%c0_57, %c0_58, %c96] : memref<1x16x128xf32, #tpu.memory_space<vmem>>, vector<1x16x32xf32>
      tpu.vector_store %arg8[%c0_57, %c0_58, %c96], %90 {strides = array<i32>} : memref<1x16x128xf32, #tpu.memory_space<vmem>>, vector<1x16x32xf32>,
    } else {
    }
    return
  }
  func.func @transform_0(%arg0: i32, %arg1: i32) -> (i32, i32) {
    %c0_i32 = arith.constant 0 : i32
    %c0_i32_0 = arith.constant 0 : i32
    %c0_i32_1 = arith.constant 0 : i32
    return %c0_i32, %c0_i32_0 : i32, i32
  }
  func.func @transform_1(%arg0: i32, %arg1: i32) -> (i32, i32, i32) {
    %c0_i32 = arith.constant 0 : i32
    %c0_i32_0 = arith.constant 0 : i32
    return %arg0, %arg1, %c0_i32 : i32, i32, i32
  }
  func.func @transform_2(%arg0: i32, %arg1: i32) -> (i32, i32, i32) {
    %c0_i32 = arith.constant 0 : i32
    %c0_i32_0 = arith.constant 0 : i32
    %c0_i32_1 = arith.constant 0 : i32
    return %arg0, %c0_i32, %c0_i32_0 : i32, i32, i32
  }
  func.func @transform_3(%arg0: i32, %arg1: i32) -> (i32, i32, i32) {
    %c0_i32 = arith.constant 0 : i32
    %c0_i32_0 = arith.constant 0 : i32
    %c0_i32_1 = arith.constant 0 : i32
    return %arg0, %c0_i32, %c0_i32_0 : i32, i32, i32
  }
  func.func @transform_4(%arg0: i32, %arg1: i32) -> (i32, i32, i32) {
    %c0_i32 = arith.constant 0 : i32
    %c0_i32_0 = arith.constant 0 : i32
    return %arg0, %arg1, %c0_i32 : i32, i32, i32
  }
  func.func @transform_5(%arg0: i32, %arg1: i32) -> (i32, i32, i32) {
    %c0_i32 = arith.constant 0 : i32
    %c0_i32_0 = arith.constant 0 : i32
    %c0_i32_1 = arith.constant 0 : i32
    return %arg0, %c0_i32, %c0_i32_0 : i32, i32, i32
  }
  func.func @transform_6(%arg0: i32, %arg1: i32) -> (i32, i32, i32) {
    %c0_i32 = arith.constant 0 : i32
    %c0_i32_0 = arith.constant 0 : i32
    %c0_i32_1 = arith.constant 0 : i32
    return %arg0, %c0_i32, %c0_i32_0 : i32, i32, i32
  }
}

</mosaic_0001>

<bundles_post_ra>
// kernel: tpu_custom_call.1
= control target key start
LH: loop header
LB: loop body
LE: loop exit
PB: predicated region body
PF: predicated region fallthrough
CT: control target
= control target key end

     0   :  { %s1194_s0 = inlined_call_operand.vmem [shape: f32[3,32], index: 0, kind: input, shape index: {}]   ;;  %s1195_s1 = inlined_call_operand.vmem [shape: f32[2,16,32], index: 1, kind: input, shape index: {}]   ;;  %s1196_s2 = inlined_call_operand.vmem [shape: f32[2,8,32], index: 2, kind: input, shape index: {}]   ;;  %s1197_s3 = inlined_call_operand.vmem [shape: f32[2,32,8], index: 3, kind: input, shape index: {}]   ;;  %s1198_s4 = inlined_call_operand.vmem [shape: f32[2,16,1], index: 4, kind: input, shape index: {}]   ;;  %s1199_s5 = inlined_call_operand.vmem [shape: f32[2,1,8], index: 5, kind: input, shape index: {}]   ;;  %s1200_s6 = inlined_call_operand.hbm [shape: f32[2,16,128], index: 6, kind: output, shape index: {}]  }
   0x1   :  { %1208 = sst [smem:[#allocation16_spill]] %s1194_s0 }
   0x2   :  { %11 = vsyncpa [#allocation6], 0 }
   0x3   :  { %13 = vsyncpa [#allocation6 + $0x1], 0  ;;  %s1026_s21 = smov 0   ;;  %s1028_s22 = smov 0  }
   0x4   :  { %s1030_s23 = smov 0   ;;  %s1032_s24 = smov 0  }
   0x5   :  { %s1034_s25 = smov 0   ;;  %s1036_s26 = smov 0  }
   0x6   :  { %s1038_s27 = smov 0   ;;  %s1040_s28 = smov 0  }
   0x7 LB: > { %1209 = sst [smem:[#allocation8_spill]] %s950_s21  ;;  %s761_s29 = sadd.s32 4294967295, %s978_s28   ;;  %s978_s28 = sphi %s1040_s28, %s19_s28   ;;  %s974_s27 = sphi %s1038_s27, %s1228_s27   ;;  %s970_s26 = sphi %s1036_s26, %s1227_s26   ;;  %s966_s25 = sphi %s1034_s25, %s1226_s25   ;;  %s962_s24 = sphi %s1032_s24, %s1231_s24   ;;  %s958_s23 = sphi %s1030_s23, %s1224_s23   ;;  %s954_s22 = sphi %s1028_s22, %s1230_s22   ;;  %s950_s21 = sphi %s1026_s21, %s1229_s21  }
   0x8   : > { %1210 = sst [smem:[#allocation9_spill]] %s958_s23  ;;  %s762_s30 = sadd.s32 4294967294, %s978_s28  }
   0x9   : > { %1211 = sst [smem:[#allocation10_spill]] %s970_s26  ;;  %s28_s7 = sadd.s32 1, %s970_s26 }
   0xa   : > { %1212 = sst [smem:[#allocation11_spill]] %s974_s27  ;;  %p29_p0 = scmp.ge.s32.totalorder %s28_s7, 2 }
   0xb   : > { %s31_s8 = sadd.s32 1, %s974_s27  ;;  %p203_p1 = scmp.ne.s32.totalorder %s958_s23, %s954_s22 }
   0xc   : > { %p204_p2 = scmp.eq.s32.totalorder %s761_s29, 3  ;;  %s1233_s7 = smov (%p29_p0, %s28_s7), 0 }
   0xd   : > { %1213 = sst [smem:[#allocation12_spill]] %s1233_s7  ;;  %s1235_s8 = smov (!%p29_p0, %s31_s8), %s974_s27 }
   0xe   : > { %p1075_p3 = por %p204_p2, %p203_p1  ;;  %p209_p4 = scmp.ne.s32.totalorder %s954_s22, %s950_s21 }
   0xf   : > { %p33_p5 = scmp.ge.s32.totalorder %s1235_s8, 2  ;;  %p210_p6 = scmp.eq.s32.totalorder %s762_s30, 3 }
  0x10   : > { %p765_p7 = scmp.ge.s32.totalorder %s978_s28, 1  ;;  %p274_p8 = scmp.lt.s32.totalorder %s978_s28, 5 }
  0x11   : > { %s1237_s8 = smov (%p33_p5, %s1235_s8), 0  ;;  %p1085_p9 = por %p210_p6, %p209_p4 }
  0x12   : > { %1215 = sst [smem:[#allocation13_spill]] %s1237_s8  ;;  %p275_p10 = pnand %p765_p7, %p274_p8 }
  0x13   : > { %s1216_s10 = scalar_select %p1085_p9, 1, 0 }
  0x14   : > { %s190_s11 = ssub.s32 %s974_s27, %s1237_s8  ;;  %s193_s12 = sadd.s32 1, %s958_s23 }
  0x15   : > { %1217 = sst [smem:[#allocation14_spill]] %s1216_s10  ;;  %p191_p11 = scmp.eq.s32.totalorder %s190_s11, 0 }
  0x16   : > { %278 = sbr.rel (%p275_p10) target bundleno = 1058 (0x422), region = 44  ;;  %s1204_s14 = sand.u32 (!%p275_p10), 1, %s954_s22  }
  0x17   : > { %s1093_s13 = scalar_select %p191_p11, %s958_s23, %s193_s12  }
  0x18   : > { %p327_p12 = scmp.lt.s32.totalorder (!%p275_p10), %s966_s25, 1  ;;  %s1219_s0 = sld [smem:[#allocation16_spill]] (!%p275_p10) }
  0x19   : > { %1218 = sst [smem:[#allocation15_spill]] %s1093_s13  ;;  %s766_s17 = sshll.u32 (!%p275_p10), %s1204_s14, 4 }
  0x1a   : > { %p329_p13 = scmp.lt.s32.totalorder (!%p275_p10), %s962_s24, 1  ;;  %s1124_s26 = scalar_lea.vmem (!%p275_p10), [#allocation5], %s766_s17 }
  0x1b   : > { %s328_s18 = scalar_select %p327_p12, %s966_s25, 1 }
  0x1c   : > { %s330_s19 = scalar_select %p329_p13, %s962_s24, 1 }
  0x1d   : > { %s767_s20 = sshll.u32 %s328_s18, 1  ;;  %s769_s29 = sshll.u32 %s328_s18, 3 }
  0x1e   : > { %v363_v0 = vld [vmem:[%s1219_s0] sm:$0x7]  ;;  %s332_s30 = sadd.s32 %s767_s20, %s330_s19  ;;  %s338_s8 = scalar_lea.vmem %s1196_s2, %s769_s29 }
  0x1f   : > { %s768_s7 = sshll.u32 %s332_s30, 3  ;;  %s786_s27 = sshll.u32 %s328_s18, 5  ;;  %v356_v1 = vld [vmem:[%s338_s8] sm:$0xff] }
  0x20   : > { %s334_s15 = scalar_lea.vmem %s1195_s1, %s768_s7  ;;  %s343_s14 = scalar_lea.vmem %s1197_s3, %s786_s27 }
  0x21   : > { %s351_s21 = scalar_lea.vmem %s1198_s4, %s768_s7  ;;  %s354_s11 = scalar_lea.vmem %s1199_s5, %s328_s18  ;;  %v1120_v2 = vld [vmem:[%s334_s15] sm:$0xff]  ;;  %v358_v4 = vld [vmem:[%s343_s14 + $0x8] sm:$0xff]  ;;  %v359_v5 = vld [vmem:[%s343_s14 + $0x10] sm:$0xff] }
  0x22   : > { %v357_v3 = vld [vmem:[%s343_s14] sm:$0xff]  ;;  %v360_v6 = vld [vmem:[%s343_s14 + $0x18] sm:$0xff]  ;;  %p774_p0 = scmp.ne.s32.totalorder %s962_s24, 0 }
  0x23   : > { %v1122_v7 = vld [vmem:[%s351_s21] sm:$0xff] }
  0x24   : > { %v362_v8 = vld [vmem:[%s354_s11] sm:$0x1]  ;;  %367 = sbr.rel (%p774_p0) target bundleno = 45 (0x2d), region = 48 }
  0x29   : > { %vm368_vm0 = vcmask 0   ;;  %vm371_vm1 = vcmask 253952   ;;  %v980_v9 = vmov -inf   ;;  %v981_v10 = vmov 0.0  }
  0x2a   : > { %369 = vst.msk [vmem:[#allocation2] sm:$0x1] %vm368_vm0, %v980_v9 }
  0x2b   : > { %370 = vst.msk [vmem:[#allocation3] sm:$0x1] %vm368_vm0, %v981_v10 }
  0x2c   : > { %372 = vst.msk [vmem:[#allocation4] sm:$0x1] %vm371_vm1, %v981_v10 }
  0x2d PF: > { %v377_v11 = vperm.slane %v363_v0, 0  ;;  %406 = vmatpush.msra.mxu0 %v360_v6  ;;  %v373_v12 = vperm.slane %v363_v0, 2  ;;  %v375_v13 = vperm.slane %v363_v0, 1  ;;  %448 = vmatpush.msra.mxu1 %v356_v1  ;;  %vm379_vm2 = vcmask 261120   ;;  %s984_s0 = smov 32   ;;  %s985_s21 = smov 64  }
  0x2e   : > { %541 = vmatpush.msra.mxu2 %v1120_v2  ;;  %v982_v18 = vmov 0   ;;  %v383_v19 = vmul.f32 -1e+10, %v1122_v7  ;;  %v385_v22 = vmul.f32 -1e+10, %v362_v8  ;;  %vm418_vm3 = vcmask 64512  }
  0x2f   : > { %v378_v14 = vmul.f32 %v377_v11, %v1120_v2  ;;  %407 = vmatpush.msra.mxu0 %v359_v5  ;;  %v374_v15 = vmul.f32 %v373_v12, %v1120_v2  ;;  %870 = vset.pattern.permute.xlu0 %v982_v18  ;;  %vm481_vm4 = vcmask 0   ;;  %vm472_vm5 = vcmask 7168   ;;  %s986_s23 = smov 96   ;;  %s779_s27 = sshll.u32 %s962_s24, 3 }
  0x30   : > { %872 = vset.pattern.permute.xlu1 %v982_v18  ;;  %v415_v24 = vperm.slane %v385_v22, 0  ;;  %vm550_vm6 = vcmp.le.f32.partialorder %v1122_v7, 0.5  ;;  %v983_v60 = vmov 0.0   ;;  %vm547_vm7 = vcmask 253952   ;;  %s579_s7 = scalar_lea.vmem %s1124_s26, %s779_s27 [#allocation5]  ;;  %p780_p1 = scmp.ne.s32.totalorder %s962_s24, 1 }
  0x31   : > { %v380_v16 = vsel %vm379_vm2, %v378_v14, 0.0  ;;  %408 = vmatpush.msra.mxu0 %v358_v4  ;;  %v376_v17 = vadd.f32 %v375_v13, %v374_v15  ;;  %v459_v37 = vld [vmem:[#allocation2] sm:$0x1]  ;;  %v778_v61 = vsel %vm550_vm6, 1.0, %v983_v60  ;;  %vm575_vm8 = vcmask 523264   ;;  %s988_s24 = smov (!%p780_p1), 96  }
  0x32   : > { %381 = vadd.xlane.f32.xlu0 %v380_v16  ;;  %v470_v54 = vld [vmem:[#allocation3] sm:$0x1]  ;;  %vm577_vm9 = vcmask 785408  }
  0x33   : > { %409 = vmatpush.msra.mxu0 %v357_v3  ;;  %v483_v9 = vld [vmem:[#allocation4] sm:$0x1] }
  0x34   : > { %775 = vmatmul.msk.f32.vlgmr.msra.gmra.mxu0 %vm379_vm2, %v376_v17 }
  0xa5   : > { %v382_v20 = vpop.xlane.xlu0 %381 }
  0xa6   : > { %v384_v21 = vadd.f32 %v383_v19, %v382_v20 }
  0xa8   : > { %388 = vperm.xlu0 %870, %v384_v21  }
  0xb1   : > { %v411_v23 = vpop.f32.mrf.mxu0 }
 0x11a   : > { %v389_v25 = vpop.permute.xlu0 %388 }
 0x11b   : > { %v412_v26 = vadd.f32 %v411_v23, %v389_v25 }
 0x11d   : > { %v417_v27 = vadd.f32 %v415_v24, %v412_v26 }
 0x11f   : > { %v419_v28 = vsel %vm418_vm3, %v417_v27, -inf }
 0x120   : > { %420 = vmax.xlane.f32.xlu1 %v419_v28 }
 0x193   : > { %v421_v29 = vpop.xlane.xlu1 %420 }
 0x194   : > { %v422_v30 = vsub.f32 %v417_v27, %v421_v29  ;;  %v453_v31 = vrot.slane %v421_v29, 4 }
 0x196   : > { %v423_v32 = vmul.f32 1.442695, %v422_v30  ;;  %v454_v33 = vmax.f32 %v421_v29, %v453_v31 }
 0x198   : > { %873 = vpow2.f32 %v423_v32  ;;  %v455_v34 = vrot.slane %v454_v33, 2 }
 0x19a   : > { %v456_v35 = vmax.f32 %v454_v33, %v455_v34 }
 0x19c   : > { %v457_v36 = vrot.slane %v456_v35, 1 }
 0x19e   : > { %v874_v38 = vpop.eup %873  ;;  %v458_v39 = vmax.f32 %v456_v35, %v457_v36 }
 0x19f   : > { %v425_v40 = vsel %vm418_vm3, %v874_v38, 0.0 }
 0x1a0   : > { %v460_v41 = vmax.f32 %v459_v37, %v458_v39  ;;  %426 = vadd.xlane.f32.xlu1 %v425_v40 }
 0x1a2   : > { %v465_v42 = vperm.slane %v460_v41, 0  ;;  %549 = vst.msk [vmem:[#allocation2] sm:$0x1] %vm481_vm4, %v460_v41  ;;  %v461_v45 = vsub.f32 %v459_v37, %v460_v41 }
 0x1a4   : > { %v467_v43 = vsub.f32 %v421_v29, %v465_v42  ;;  %v462_v46 = vmul.f32 1.442695, %v461_v45 }
 0x1a6   : > { %v468_v44 = vmul.f32 1.442695, %v467_v43 }
 0x1a8   : > { %875 = vpow2.f32 %v468_v44 }
 0x1a9   : > { %877 = vpow2.f32 %v462_v46 }
 0x1ae   : > { %v876_v47 = vpop.eup %875 }
 0x1af   : > { %491 = vxpose.xlu2.b32.start.end [1/1] (short) (narrow) %v876_v47, 8  ;;  %v473_v48 = vsel %vm472_vm5, %v876_v47, 0.0  ;;  %v878_v53 = vpop.eup %877 }
 0x1b0   : > { %v474_v49 = vrot.slane %v473_v48, 4  ;;  %v471_v57 = vmul.f32 %v878_v53, %v470_v54 }
 0x1b2   : > { %v475_v50 = vadd.f32 %v474_v49, %v473_v48 }
 0x1b4   : > { %v476_v51 = vrot.slane %v475_v50, 2 }
 0x1b6   : > { %v477_v52 = vadd.f32 %v476_v51, %v475_v50 }
 0x1b8   : > { %v478_v55 = vrot.slane %v477_v52, 1 }
 0x1b9   : > { %486 = vperm.xlu1 %872, %v878_v53  }
 0x1ba   : > { %v479_v56 = vadd.f32 %v478_v55, %v477_v52 }
 0x1bc   : > { %v480_v58 = vadd.f32 %v479_v56, %v471_v57 }
 0x1be   : > { %482 = vst.msk [vmem:[#allocation3] sm:$0x1] %vm481_vm4, %v480_v58 }
 0x211   : > { %871 = vset.pattern.permute.xlu2 %v982_v18 }
 0x213   : > { %v427_v59 = vpop.xlane.xlu1 %426 }
 0x214   : > { %879 = vrcp.f32 %v427_v59 }
 0x218   : > { %555 = vperm.xlu2 %871, %v778_v61  }
 0x21a   : > { %v880_v62 = vpop.eup %879 }
 0x21b   : > { %v429_v63 = vmul.f32 %v880_v62, %v874_v38 }
 0x21d   : > { %776 = vmatmul.msk.f32.vlgmr.msra.gmra.mxu1 %vm418_vm3, %v429_v63 }
 0x22b   : > { %v487_v7 = vpop.permute.xlu1 %486 }
 0x22c   : > { %v489_v8 = vperm.slane %v487_v7, 0 }
 0x22e   : > { %v490_v10 = vmul.f32 %v489_v8, %v483_v9 }
 0x248   : > { %v507_v0 = vpop.trf.xlu2 }
 0x249   : > { %777 = vmatmul.msk.f32.vlgmr.msra.gmra.mxu2 %vm418_vm3, %v507_v0 }
 0x272   : > { %v556_v1 = vpop.permute.xlu2 %555 }
 0x273   : > { %v558_v3 = vmul.f32 %v556_v1, %v1120_v2 }
 0x29a   : > { %v450_v4 = vpop.f32.mrf.mxu1 }
 0x29b   : > { %v559_v5 = vmul.f32 %v556_v1, %v450_v4 }
 0x29d   : > { %v560_v6 = vmul.f32 %v559_v5, %v558_v3  ;;  %563 = vrot.lane.b32.xlu1 %v559_v5, %s984_s0 }
 0x29f   : > { %567 = vrot.lane.b32.xlu0 %v560_v6, %s985_s21 }
 0x2a5   : > { %571 = vrot.lane.b32.xlu1 %v558_v3, %s986_s23 }
 0x2cc   : > { %v543_v11 = vpop.f32.mrf.mxu2 }
 0x2cd   : > { %v546_v12 = vadd.f32 %v543_v11, %v490_v10 }
 0x2cf   : > { %548 = vst.msk [vmem:[#allocation4] sm:$0x1] %vm547_vm7, %v546_v12 }
 0x30f   : > { %v564_v2 = vpop.permute.xlu1 %563 }
 0x310   : > { %v574_v13 = vsel %vm379_vm2, %v558_v3, %v564_v2 }
 0x311   : > { %v568_v14 = vpop.permute.xlu0 %567 }
 0x312   : > { %v576_v15 = vsel %vm575_vm8, %v574_v13, %v568_v14 }
 0x315   : > { %584 = sbr.rel (%p780_p1) target bundleno = 1042 (0x412), region = 52 }
 0x317   : > { %v572_v16 = vpop.permute.xlu1 %571 }
 0x318   : > { %v578_v17 = vsel %vm577_vm9, %v576_v15, %v572_v16 }
 0x319   : > { %580 = vst [vmem:[%s579_s7] sm:$0xff] %v578_v17 }
 0x31a   : > { %v586_v18 = vld [vmem:[#allocation3] sm:$0x1]  ;;  %v987_v19 = vmov 0   ;;  %v585_v22 = vld [vmem:[#allocation4] sm:$0x1]  ;;  %vm610_vm10 = vcmask 1048320  }
 0x31b   : > { %881 = vset.pattern.permute.xlu0 %v987_v19  ;;  %882 = vrcp.f32 %v586_v18 }
 0x320   : > { %v596_v25 = vld [vmem:[%s1124_s26 + $0x8] sm:$0xff]  ;;  %v595_v26 = vld [vmem:[%s1124_s26] sm:$0xff] }
 0x321   : > { %v883_v20 = vpop.eup %882 }
 0x322   : > { %590 = vperm.xlu0 %881, %v883_v20  }
 0x394   : > { %v591_v21 = vpop.permute.xlu0 %590 }
 0x395   : > { %v593_v23 = vperm.slane %v591_v21, 0 }
 0x397   : > { %v594_v24 = vmul.f32 %v593_v23, %v585_v22 }
 0x399   : > { %v598_v27 = vperm.slane %v594_v24, 0 }
 0x39b   : > { %v601_v28 = vmul.f32 %v598_v27, %v596_v25  ;;  %v600_v29 = vmul.f32 %v598_v27, %v595_v26 }
 0x39d   : > { %606 = vrot.lane.b32.xlu1 %v601_v28, %s988_s24  ;;  %604 = vrot.lane.b32.xlu0 %v600_v29, %s988_s24 }
 0x40f   : > { %v607_v30 = vpop.permute.xlu1 %606  ;;  %v605_v31 = vpop.permute.xlu0 %604 }
 0x410   : > { %612 = vst.msk [vmem:[%s1124_s26 + $0x8] sm:$0xff] %vm610_vm10, %v607_v30 }
 0x411   : > { %611 = vst.msk [vmem:[%s1124_s26] sm:$0xff] %vm610_vm10, %v605_v31 }
 0x412 PF: > { %s787_s8 = sshll.u32 %s966_s25, 4  ;;  %s626_s17 = sshll.u32 %s1124_s26, 4  ;;  %s627_s17 = int_to_ptr.vmem [resolvable:$true] %s626_s17 }
 0x413   : > { %s625_s14 = scalar_lea.hbm %s1200_s6, %s787_s8  ;;  %s1220_s29 = sand.u32 1, %s954_s22  }
 0x414   : > { %s628_s18 = sshll.u32 %s625_s14, 4  ;;  %s614_s30 = scalar_lea.sflag [#allocation6], %s1220_s29  ;;  %s629_s18 = int_to_ptr.hbm [resolvable:$true] %s628_s18 }
 0x415   : > { %s898_s12 = sshra.s32 %s629_s18, 4  ;;  %s904_s25 = scalar_lea.hbm %s1200_s6, 32  ;;  %s899_s12 = int_to_ptr.hbm [resolvable:$true] %s898_s12 }
 0x416   : > { %s900_s15 = scalar_lea.hbm %s899_s12, 16  ;;  %p905_p6 = scmp.lt.s32.totalorder %s899_s12, %s1200_s6 }
 0x417   : > { %p901_p2 = scmp.ne.s32.totalorder %s899_s12, %s900_s15  ;;  %p906_p7 = scmp.lt.s32.totalorder %s904_s25, %s900_s15 }
 0x419   : > { %p902_p4 = pnand %p901_p2, %p1075_p3  ;;  %p907_p8 = por %p906_p7, %p905_p6 }
 0x41b   : > { %p903_p5 = pneg %p902_p4 }
 0x41d   : > { %p908_p10 = pnand %p907_p8, %p903_p5 }
 0x41f   : > { %911 = shalt.err (!%p908_p10)
}
 0x420   : > { %s989_s26 = smov 128   ;;  %s990_s0 = smov 8  }
 0x421   : > { %788 = dma.vmem_to_hbm [thread:$0]  (%p1075_p3), %s627_s17, 256, %s629_s18, %s614_s30, %s989_s26, %s989_s26, %s990_s0  }
 0x422 PF: > { %s1221_s21 = sld [smem:[#allocation8_spill]]  ;;  %p794_p11 = scmp.ge.s32.totalorder %s978_s28, 2 }
 0x424   : > { %p791_p12 = pnand %p794_p11, %p1085_p9 }
 0x426   : > { %p792_p13 = pneg %p791_p12 }
 0x428   : > { %s643_s27 = sand.u32 1, %s1221_s21  }
 0x429   : > { %s644_s7 = scalar_lea.sflag [#allocation6], %s643_s27 }
 0x42a   : > { %945 = dma.done.wait (%p792_p13), %s644_s7, 256  }
 0x42b   : > { %947 = vsyncadd (%p792_p13), %s644_s7, 4294967040  ;;  %s19_s28 = sadd.s32 1, %s978_s28   ;;  %s1223_s24 = sld [smem:[#allocation9_spill]] }
 0x42c   : > { %p16_p0 = scmp.ge.s32.totalorder %s19_s28, 6   ;;  %s1224_s23 = sld [smem:[#allocation15_spill]] }
 0x42d   : > { %s1225_s9 = sld [smem:[#allocation10_spill]]  ;;  %s1229_s21 = smov %s954_s22 }
 0x42e   : > { %s1226_s25 = sld [smem:[#allocation11_spill]] }
 0x42f   : > { %s1227_s26 = sld [smem:[#allocation12_spill]]  ;;  %18 = sbr.rel (!%p16_p0) target bundleno = 7 (0x7), region = 100 }
 0x430   : > { %s1228_s27 = sld [smem:[#allocation13_spill]] }
 0x431   : > { %s1230_s22 = smov %s1223_s24 }
 0x433   : > { %s1231_s24 = smov %s1225_s9 }
 0x434   :  { %650 = vsyncpa [#allocation6], 1 }
 0x435   :  { %652 = vsyncpa [#allocation6 + $0x1], 1 }

</bundles_post_ra>
